<compile_context>
chip_gen: v5e
topology: v5e:2x2
jax: 0.10.0
libtpu: 0.0.40
codegen_flags: <defaults>
</compile_context>

<pallas_src>
import jax
import jax.numpy as jnp
from jax.experimental import pallas as pl
from jax.experimental.pallas import tpu as pltpu

# Below this total size, jnp.concatenate beats a custom-call launch.
_SMALL_TOTAL_BYTES = 4 * 1024 * 1024  # 4 MiB
# Above this per-input size, split the copy into several concurrent DMAs.
_SPLIT_BYTES = 8 * 1024 * 1024  # 8 MiB
_MAX_SPLITS = 4


def _split_plan(dim_size, n_splits):
    """Evenly partition [0, dim_size) into n_splits contiguous (lo, hi) ranges."""
    n_splits = max(1, min(n_splits, dim_size))
    chunk = pl.cdiv(dim_size, n_splits)
    bounds = []
    lo = 0
    while lo < dim_size:
        hi = min(lo + chunk, dim_size)
        bounds.append((lo, hi))
        lo = hi
    return bounds


def _make_concat_kernel(shapes, sizes, axis, ndim, itemsize):
    """Build a kernel that DMAs each HBM input into its slice of the HBM output."""
    n_in = len(sizes)

    # Static channel offsets along the concat axis.
    offsets = []
    off = 0
    for c in sizes:
        offsets.append(off)
        off += c

    # Pick a major (non-minor, non-concat) axis to split large copies along.
    split_axis = None
    for d in range(max(0, ndim - 2)):
        if d != axis and shapes[0][d] > 1:
            split_axis = d
            break

    # Per-input split plans (trace-time static).
    plans = []
    for shp in shapes:
        nbytes = itemsize
        for d in shp:
            nbytes *= d
        if split_axis is not None and nbytes > _SPLIT_BYTES:
            plans.append(_split_plan(shp[split_axis], _MAX_SPLITS))
        else:
            plans.append([None])  # single DMA, full input
    total_sems = sum(len(p) for p in plans)

    def kernel(*refs):
        # refs = (*in_hbm_refs, out_hbm_ref); everything lives in HBM (pl.ANY).
        in_refs = refs[:n_in]
        out_ref = refs[n_in]

        def body(sems):
            copies = []
            sem_idx = 0
            for r, off_i, c_i, plan in zip(in_refs, offsets, sizes, plans):
                out_base = [slice(None)] * ndim
                out_base[axis] = slice(off_i, off_i + c_i)
                for rng in plan:
                    if rng is None:
                        src = r
                        dst = out_ref.at[tuple(out_base)]
                    else:
                        lo, hi = rng
                        in_idx = [slice(None)] * ndim
                        in_idx[split_axis] = slice(lo, hi)
                        out_idx = list(out_base)
                        out_idx[split_axis] = slice(lo, hi)
                        src = r.at[tuple(in_idx)]
                        dst = out_ref.at[tuple(out_idx)]
                    cp = pltpu.make_async_copy(src, dst, sems.at[sem_idx])
                    cp.start()
                    copies.append(cp)
                    sem_idx += 1
            # All DMAs stream concurrently; block until every one has landed.
            for cp in copies:
                cp.wait()

        pl.run_scoped(body, pltpu.SemaphoreType.DMA((total_sems,)))

    return kernel


def concat(xs, dimension=1, *, force_pallas=False):
    """Concatenate same-rank arrays along `dimension` (default 1 = channel, NCHW)."""
    assert len(xs) >= 1
    ndim = xs[0].ndim
    axis = dimension % ndim
    dtype = xs[0].dtype
    for x in xs:
        assert x.ndim == ndim and x.dtype == dtype
        for d in range(ndim):
            if d != axis:
                assert x.shape[d] == xs[0].shape[d], "non-concat dims must match"

    # Minor-axis (lane/sublane) concats produce sub-tile-aligned HBM windows;
    # let XLA handle those rather than risk a slow/unsupported masked DMA path.
    if axis >= ndim - 2:
        return jnp.concatenate(xs, axis=axis)

    total_bytes = sum(int(x.size) * x.dtype.itemsize for x in xs)

    # Tiny concat: launch overhead of a custom call dominates; let XLA fuse it.
    if total_bytes < _SMALL_TOTAL_BYTES and not force_pallas:
        return jnp.concatenate(xs, axis=axis)

    sizes = [int(x.shape[axis]) for x in xs]
    shapes = [tuple(int(s) for s in x.shape) for x in xs]
    out_shape = list(shapes[0])
    out_shape[axis] = sum(sizes)
    out_shape = tuple(out_shape)

    kernel = _make_concat_kernel(shapes, tuple(sizes), axis, ndim, dtype.itemsize)

    return pl.pallas_call(
        kernel,
        out_shape=jax.ShapeDtypeStruct(out_shape, dtype),
        # Everything stays in HBM; the kernel moves data with explicit DMAs.
        in_specs=[pl.BlockSpec(memory_space=pl.ANY) for _ in xs],
        out_specs=pl.BlockSpec(memory_space=pl.ANY),
        # Memory-bound: one full read + one full write of every byte.
        cost_estimate=pl.CostEstimate(
            flops=0, transcendentals=0, bytes_accessed=2 * total_bytes
        ),
    )(*xs)


if __name__ == "__main__":
    key = jax.random.PRNGKey(0)
    k1, k2, k3 = jax.random.split(key, 3)

    # Small NCHW inputs consistent with a YOLO-style feature concat.
    x1 = jax.random.normal(k1, (2, 4, 16, 16), dtype=jnp.float32)
    x2 = jax.random.normal(k2, (2, 8, 16, 16), dtype=jnp.float32)
    x3 = jax.random.normal(k3, (2, 4, 16, 16), dtype=jnp.float32)

    ref = jnp.concatenate([x1, x2, x3], axis=1)

    # Default dispatcher: tiny inputs take the native-concatenate fast path.
    out_auto = jax.block_until_ready(concat([x1, x2, x3], dimension=1))
    assert out_auto.shape == ref.shape, (out_auto.shape, ref.shape)
    assert jnp.array_equal(out_auto, ref), "dispatch path mismatch vs reference"

    # Force the Pallas DMA kernel path to exercise the kernel itself.
    out_pallas = jax.block_until_ready(
        concat([x1, x2, x3], dimension=1, force_pallas=True)
    )
    assert out_pallas.shape == ref.shape, (out_pallas.shape, ref.shape)
    assert jnp.array_equal(out_pallas, ref), "pallas path mismatch vs reference"

    print("KERNEL_OK")
</pallas_src>

<mosaic_0001>
module attributes {stable_mosaic.version = 11 : i64} {
  func.func @kernel(%arg0: memref<2x4x16x16xf32, #tpu.memory_space<any>>, %arg1: memref<2x8x16x16xf32, #tpu.memory_space<any>>, %arg2: memref<2x4x16x16xf32, #tpu.memory_space<any>>, %arg3: memref<2x16x16x16xf32, #tpu.memory_space<any>>) attributes {dimension_semantics = [], scalar_prefetch = 0 : i64, scratch_operands = 0 : i64, tpu.core_type = #tpu.core_type<tc>} {
    "tpu.region"() ({
      %0 = tpu.sem_alloc : memref<3x!tpu.dma_semaphore, #tpu.memory_space<semaphore_mem>>
      %c0_i32 = arith.constant 0 : i32
      %c0_i32_0 = arith.constant 0 : i32
      %c0_i32_1 = arith.constant 0 : i32
      %c0_i32_2 = arith.constant 0 : i32
      %c0_i32_3 = arith.constant 0 : i32
      %1 = tpu.memref_slice %arg3[%c0_i32_0, %c0_i32_1, %c0_i32_2, %c0_i32_3] : memref<2x16x16x16xf32, #tpu.memory_space<any>> -> memref<2x4x16x16xf32, #tpu.memory_space<any>>
      %2 = tpu.memref_slice %0[%c0_i32] : memref<3x!tpu.dma_semaphore, #tpu.memory_space<semaphore_mem>> -> memref<1x!tpu.dma_semaphore, #tpu.memory_space<semaphore_mem>>
      %3 = tpu.memref_squeeze %2 : memref<1x!tpu.dma_semaphore, #tpu.memory_space<semaphore_mem>> -> memref<!tpu.dma_semaphore, #tpu.memory_space<semaphore_mem>>
      tpu.enqueue_dma source(%arg0 : memref<2x4x16x16xf32, #tpu.memory_space<any>>) target(%1 : memref<2x4x16x16xf32, #tpu.memory_space<any>>) target_semaphore(%3 : memref<!tpu.dma_semaphore, #tpu.memory_space<semaphore_mem>>)
      %c1_i32 = arith.constant 1 : i32
      %c0_i32_4 = arith.constant 0 : i32
      %c4_i32 = arith.constant 4 : i32
      %c0_i32_5 = arith.constant 0 : i32
      %c0_i32_6 = arith.constant 0 : i32
      %4 = tpu.memref_slice %arg3[%c0_i32_4, %c4_i32, %c0_i32_5, %c0_i32_6] : memref<2x16x16x16xf32, #tpu.memory_space<any>> -> memref<2x8x16x16xf32, #tpu.memory_space<any>>
      %5 = tpu.memref_slice %0[%c1_i32] : memref<3x!tpu.dma_semaphore, #tpu.memory_space<semaphore_mem>> -> memref<1x!tpu.dma_semaphore, #tpu.memory_space<semaphore_mem>>
      %6 = tpu.memref_squeeze %5 : memref<1x!tpu.dma_semaphore, #tpu.memory_space<semaphore_mem>> -> memref<!tpu.dma_semaphore, #tpu.memory_space<semaphore_mem>>
      tpu.enqueue_dma source(%arg1 : memref<2x8x16x16xf32, #tpu.memory_space<any>>) target(%4 : memref<2x8x16x16xf32, #tpu.memory_space<any>>) target_semaphore(%6 : memref<!tpu.dma_semaphore, #tpu.memory_space<semaphore_mem>>)
      %c2_i32 = arith.constant 2 : i32
      %c0_i32_7 = arith.constant 0 : i32
      %c12_i32 = arith.constant 12 : i32
      %c0_i32_8 = arith.constant 0 : i32
      %c0_i32_9 = arith.constant 0 : i32
      %7 = tpu.memref_slice %arg3[%c0_i32_7, %c12_i32, %c0_i32_8, %c0_i32_9] : memref<2x16x16x16xf32, #tpu.memory_space<any>> -> memref<2x4x16x16xf32, #tpu.memory_space<any>>
      %8 = tpu.memref_slice %0[%c2_i32] : memref<3x!tpu.dma_semaphore, #tpu.memory_space<semaphore_mem>> -> memref<1x!tpu.dma_semaphore, #tpu.memory_space<semaphore_mem>>
      %9 = tpu.memref_squeeze %8 : memref<1x!tpu.dma_semaphore, #tpu.memory_space<semaphore_mem>> -> memref<!tpu.dma_semaphore, #tpu.memory_space<semaphore_mem>>
      tpu.enqueue_dma source(%arg2 : memref<2x4x16x16xf32, #tpu.memory_space<any>>) target(%7 : memref<2x4x16x16xf32, #tpu.memory_space<any>>) target_semaphore(%9 : memref<!tpu.dma_semaphore, #tpu.memory_space<semaphore_mem>>)
      %c0_i32_10 = arith.constant 0 : i32
      %c0_i32_11 = arith.constant 0 : i32
      %c0_i32_12 = arith.constant 0 : i32
      %c0_i32_13 = arith.constant 0 : i32
      %c0_i32_14 = arith.constant 0 : i32
      %10 = tpu.memref_slice %arg3[%c0_i32_11, %c0_i32_12, %c0_i32_13, %c0_i32_14] : memref<2x16x16x16xf32, #tpu.memory_space<any>> -> memref<2x4x16x16xf32, #tpu.memory_space<any>>
      %11 = tpu.memref_slice %0[%c0_i32_10] : memref<3x!tpu.dma_semaphore, #tpu.memory_space<semaphore_mem>> -> memref<1x!tpu.dma_semaphore, #tpu.memory_space<semaphore_mem>>
      %12 = tpu.memref_squeeze %11 : memref<1x!tpu.dma_semaphore, #tpu.memory_space<semaphore_mem>> -> memref<!tpu.dma_semaphore, #tpu.memory_space<semaphore_mem>>
      tpu.wait_dma2 semaphore(%12 : memref<!tpu.dma_semaphore, #tpu.memory_space<semaphore_mem>>) src(%arg0 : memref<2x4x16x16xf32, #tpu.memory_space<any>>) dst(%10 : memref<2x4x16x16xf32, #tpu.memory_space<any>>)
      %c1_i32_15 = arith.constant 1 : i32
      %c0_i32_16 = arith.constant 0 : i32
      %c4_i32_17 = arith.constant 4 : i32
      %c0_i32_18 = arith.constant 0 : i32
      %c0_i32_19 = arith.constant 0 : i32
      %13 = tpu.memref_slice %arg3[%c0_i32_16, %c4_i32_17, %c0_i32_18, %c0_i32_19] : memref<2x16x16x16xf32, #tpu.memory_space<any>> -> memref<2x8x16x16xf32, #tpu.memory_space<any>>
      %14 = tpu.memref_slice %0[%c1_i32_15] : memref<3x!tpu.dma_semaphore, #tpu.memory_space<semaphore_mem>> -> memref<1x!tpu.dma_semaphore, #tpu.memory_space<semaphore_mem>>
      %15 = tpu.memref_squeeze %14 : memref<1x!tpu.dma_semaphore, #tpu.memory_space<semaphore_mem>> -> memref<!tpu.dma_semaphore, #tpu.memory_space<semaphore_mem>>
      tpu.wait_dma2 semaphore(%15 : memref<!tpu.dma_semaphore, #tpu.memory_space<semaphore_mem>>) src(%arg1 : memref<2x8x16x16xf32, #tpu.memory_space<any>>) dst(%13 : memref<2x8x16x16xf32, #tpu.memory_space<any>>)
      %c2_i32_20 = arith.constant 2 : i32
      %c0_i32_21 = arith.constant 0 : i32
      %c12_i32_22 = arith.constant 12 : i32
      %c0_i32_23 = arith.constant 0 : i32
      %c0_i32_24 = arith.constant 0 : i32
      %16 = tpu.memref_slice %arg3[%c0_i32_21, %c12_i32_22, %c0_i32_23, %c0_i32_24] : memref<2x16x16x16xf32, #tpu.memory_space<any>> -> memref<2x4x16x16xf32, #tpu.memory_space<any>>
      %17 = tpu.memref_slice %0[%c2_i32_20] : memref<3x!tpu.dma_semaphore, #tpu.memory_space<semaphore_mem>> -> memref<1x!tpu.dma_semaphore, #tpu.memory_space<semaphore_mem>>
      %18 = tpu.memref_squeeze %17 : memref<1x!tpu.dma_semaphore, #tpu.memory_space<semaphore_mem>> -> memref<!tpu.dma_semaphore, #tpu.memory_space<semaphore_mem>>
      tpu.wait_dma2 semaphore(%18 : memref<!tpu.dma_semaphore, #tpu.memory_space<semaphore_mem>>) src(%arg2 : memref<2x4x16x16xf32, #tpu.memory_space<any>>) dst(%16 : memref<2x4x16x16xf32, #tpu.memory_space<any>>)
      tpu.yield
    }) : () -> ()
    return
  }
}

</mosaic_0001>

<bundles_post_ra>
// kernel: tpu_custom_call.1
= control target key start
LH: loop header
LB: loop body
LE: loop exit
PB: predicated region body
PF: predicated region fallthrough
CT: control target
= control target key end

     0   :  { %s96_s18 = smov 1024   ;;  %s97_s19 = smov 4096   ;;  %s146_s0 = inlined_call_operand.hbm [shape: f32[2,4,16,16], index: 0, kind: input, shape index: {}]   ;;  %s147_s1 = inlined_call_operand.hbm [shape: f32[2,8,16,16], index: 1, kind: input, shape index: {}]   ;;  %s148_s2 = inlined_call_operand.hbm [shape: f32[2,4,16,16], index: 2, kind: input, shape index: {}]   ;;  %s149_s3 = inlined_call_operand.hbm [shape: f32[2,16,16,16], index: 3, kind: output, shape index: {}]  }
   0x1   :  { %s12_s14 = sshll.u32 %s146_s0, 4  ;;  %s14_s17 = sshll.u32 %s149_s3, 4  ;;  %s13_s14 = int_to_ptr.hbm [resolvable:$true] %s12_s14  ;;  %s15_s17 = int_to_ptr.hbm [resolvable:$true] %s14_s17 }
   0x2   :  { %19 = sst [smem:[#allocation4]] %s96_s18  ;;  %s98_s20 = smov 64  }
   0x3   :  { %21 = sst [smem:[#allocation4 + $0x1]] %s97_s19  ;;  %s99_s21 = smov [#allocation2]  }
   0x4   :  { %23 = sst [smem:[#allocation4 + $0x2]] %s98_s20  ;;  %s100_s22 = smov [#allocation3]  }
   0x5   :  { %s101_s23 = smov 0   ;;  %s102_s24 = smov 2048  }
   0x6   :  { %25 = dma.general %s13_s14, 2048, %s15_s17, %s99_s21, %s100_s22, [#allocation4], %s101_s23, 0  }
   0x7   :  { %39 = sst [smem:[#allocation6]] %s102_s24  ;;  %s26_s26 = scalar_lea.hbm %s149_s3, 64 }
   0x8   :  { %41 = sst [smem:[#allocation6 + $0x1]] %s97_s19  ;;  %s103_s27 = smov 128  }
   0x9   :  { %43 = sst [smem:[#allocation6 + $0x2]] %s103_s27  ;;  %s32_s30 = sshll.u32 %s147_s1, 4  ;;  %s33_s30 = int_to_ptr.hbm [resolvable:$true] %s32_s30 }
   0xa   :  { %s34_s4 = sshll.u32 %s26_s26, 4  ;;  %s46_s7 = scalar_lea.hbm %s149_s3, 192  ;;  %s35_s4 = int_to_ptr.hbm [resolvable:$true] %s34_s4 }
   0xb   :  { %s104_s8 = smov [#allocation2 + $0x1]   ;;  %s105_s9 = smov [#allocation5]  }
   0xc   :  { %45 = dma.general %s33_s30, 4096, %s35_s4, %s104_s8, %s105_s9, [#allocation6], %s101_s23, 0  }
   0xd   :  { %59 = sst [smem:[#allocation8]] %s96_s18  ;;  %s52_s12 = sshll.u32 %s148_s2, 4  ;;  %s53_s12 = int_to_ptr.hbm [resolvable:$true] %s52_s12 }
   0xe   :  { %61 = sst [smem:[#allocation8 + $0x1]] %s97_s19  ;;  %s54_s13 = sshll.u32 %s46_s7, 4  ;;  %s55_s13 = int_to_ptr.hbm [resolvable:$true] %s54_s13 }
   0xf   :  { %63 = sst [smem:[#allocation8 + $0x2]] %s98_s20  ;;  %s106_s1 = smov [#allocation2 + $0x2]  }
  0x10   :  { %s107_s14 = smov [#allocation7]  }
  0x11   :  { %65 = dma.general %s53_s12, 2048, %s55_s13, %s106_s1, %s107_s14, [#allocation8], %s101_s23, 0  }
  0x12   :  { %90 = dma.done.wait [#allocation2], 2048 }
  0x13   :  { %91 = vsyncadd [#allocation2], 4294965248 }
  0x14   :  { %92 = dma.done.wait [#allocation2 + $0x1], 4096 }
  0x15   :  { %93 = vsyncadd [#allocation2 + $0x1], 4294963200 }
  0x16   :  { %94 = dma.done.wait [#allocation2 + $0x2], 2048 }
  0x17   :  { %95 = vsyncadd [#allocation2 + $0x2], 4294965248 }

</bundles_post_ra>
